<compile_context>
chip_gen: v5e
topology: v5e:2x2
jax: 0.10.0
libtpu: 0.0.40
codegen_flags: <defaults>
</compile_context>

<pallas_src>
import jax
import jax.numpy as jnp
from jax.experimental import pallas as pl
from jax.experimental.pallas import tpu as pltpu

_R, _G, _B = 0.2989, 0.587, 0.114


def _round_up(x, m):
    return ((x + m - 1) // m) * m


def _replicate_shift_diffs(gray):
    """x_diff / y_diff of a replicate-(right, bottom)-padded grayscale image.

    gray: (N, H, W) -> two (N, H, W) arrays whose last column / row are zero,
    matching F.pad(..., (0,1,0,1), 'replicate') followed by the slicing diffs.
    (Init-time / reference helper only; the kernel uses pltpu.roll + masks.)
    """
    gx = jnp.concatenate([gray[:, :, 1:], gray[:, :, -1:]], axis=2)
    gy = jnp.concatenate([gray[:, 1:, :], gray[:, -1:, :]], axis=1)
    return gx - gray, gy - gray


def _make_gradient_loss_kernel(h_tile, w_pad, h_img, w_img, scale, has_weight):
    n_sub = h_tile // 8  # h_tile is always a multiple of 16

    def kernel(x_ref, c_ref, out_ref, acc_ref, cg_ref, ccy_ref, cw_ref=None):
        h = pl.program_id(1)

        @pl.when(h == 0)
        def _init():
            acc_ref[...] = jnp.zeros_like(acc_ref)

        # Grayscale of the current tile -- all VPU math in f32 (bf16 input upcast).
        gray = (_R * x_ref[0].astype(jnp.float32)
                + _G * x_ref[1].astype(jnp.float32)
                + _B * x_ref[2].astype(jnp.float32))            # (h_tile, w_pad)

        col = jax.lax.broadcasted_iota(jnp.int32, (1, w_pad), 1)
        row = jax.lax.broadcasted_iota(jnp.int32, (h_tile, 1), 0)
        grow = h * h_tile + row                                  # global image row

        # Deferred y-term of the PREVIOUS tile's bottom row: its below-neighbour
        # is row 0 of this tile.  (Non-last tiles are always fully in-bounds, and
        # the image's last row contributes exactly 0 under replicate semantics.)
        @pl.when(h > 0)
        def _deferred():
            d = (gray[0:1, :] - cg_ref[...]) - ccy_ref[...]
            t = d * d * cw_ref[...] if has_weight else d * d
            acc_ref[0:1, :] += jnp.where(col < w_img, t, 0.0)

        cx = c_ref[0].astype(jnp.float32)
        cy = c_ref[1].astype(jnp.float32)
        wgt = c_ref[2].astype(jnp.float32) if has_weight else None

        # x_diff: right-neighbour via lane roll (XLU).  Column w_img-1 is exactly
        # zero in the reference (replicate), and padded lanes are undefined, so
        # both are masked out below.
        gray_r = pltpu.roll(gray, w_pad - 1, 1)   # [:, j] -> gray[:, (j+1) % w_pad]
        x_dist = (gray_r - gray) - cx

        # y_diff: below-neighbour via sublane roll; the tile's own bottom row is
        # handled by the deferred path on the next grid step.
        gray_d = pltpu.roll(gray, h_tile - 1, 0)  # [r] -> gray[(r+1) % h_tile]
        y_dist = (gray_d - gray) - cy

        x_ok = jnp.logical_and(col < w_img - 1, grow < h_img)
        y_ok = jnp.logical_and(jnp.logical_and(col < w_img, grow < h_img - 1),
                               row < h_tile - 1)

        # Mask AFTER the weight multiply so undefined padded-block data (which may
        # be Inf/NaN) never mixes with valid terms.
        if has_weight:
            sq = (jnp.where(x_ok, x_dist * x_dist * wgt, 0.0)
                  + jnp.where(y_ok, y_dist * y_dist * wgt, 0.0))
        else:
            sq = (jnp.where(x_ok, x_dist * x_dist, 0.0)
                  + jnp.where(y_ok, y_dist * y_dist, 0.0))

        # Sublane-group partial reduction only (pure VPU adds); lanes stay dense.
        acc_ref[...] += sq.reshape(n_sub, 8, w_pad).sum(axis=0)

        # Carry this tile's bottom row for the next step's deferred y-term.
        cg_ref[...] = gray[h_tile - 1:h_tile, :]
        ccy_ref[...] = cy[h_tile - 1:h_tile, :]
        if has_weight:
            cw_ref[...] = wgt[h_tile - 1:h_tile, :]

        @pl.when(h == pl.num_programs(1) - 1)
        def _finalize():
            total = jnp.sum(acc_ref[...])                        # single x-lane reduce
            out_ref[...] = jnp.full((1, 1, 1), total * scale, dtype=out_ref.dtype)

    return kernel


class GradientLoss:
    """Pallas TPU port of the PyTorch GradientLoss module (forward pass)."""

    def __init__(self, content_image, s_mask=None, s_weight=1.0, *,
                 h_tile=None, const_dtype=jnp.bfloat16, input_dtype=jnp.bfloat16):
        content_image = jnp.asarray(content_image, jnp.float32)
        n, c, h, w = content_image.shape
        assert c == 3, "GradientLoss expects NCHW images with 3 channels"
        self._shape = (n, c, h, w)
        self._input_dtype = input_dtype

        gray_c = (_R * content_image[:, 0]
                  + _G * content_image[:, 1]
                  + _B * content_image[:, 2])
        cx, cy = _replicate_shift_diffs(gray_c)                  # (N, H, W), f32
        # Spec-faithful buffers (same contents as the PyTorch register_buffer's).
        self.content_x_diff = cx
        self.content_y_diff = cy

        # Folded per-pixel weight: (x*m)^2 + (y*m)^2 == m^2 * (x^2 + y^2), so
        # loss == mean((x_dist^2 + y_dist^2) * (1 + m^2)); m already carries
        # s_weight^2 exactly as the PyTorch module builds it.  When there is no
        # mask the weight plane is dropped entirely (w == 1 in-register).
        if s_mask is None:
            self.sky_mask = None
            has_weight = False
            consts = jnp.stack([cx, cy], axis=1)                 # (N, 2, H, W)
        else:
            m = jnp.asarray(s_mask, jnp.float32).reshape(n, h, w) * (s_weight * s_weight)
            self.sky_mask = m
            has_weight = True
            consts = jnp.stack([cx, cy, 1.0 + m * m], axis=1)    # (N, 3, H, W)
        self._consts = consts.astype(const_dtype)                # single packed DMA
        c_const = 3 if has_weight else 2

        # ---- tiling / VMEM budget -------------------------------------------
        wp = _round_up(w, 128)                                   # lane-dense last dim
        in_bytes = jnp.dtype(input_dtype).itemsize
        cst_bytes = jnp.dtype(const_dtype).itemsize

        try:  # v7x: 64 MiB VMEM per TC; v5e/v6e: 128 MiB.
            info = pltpu.get_tpu_info()
            vmem_cap = int(getattr(info, "vmem_capacity_bytes", 0)) or (64 << 20)
        except Exception:
            vmem_cap = 64 << 20
        vmem_budget = int(min((vmem_cap * 3) // 4, 96 << 20))    # ~48 MiB on v7x

        if h_tile is None:
            # Per-row VMEM: double-buffered image + constant blocks, plus ~12 f32
            # rows of elementwise/XLU temporaries (gray, rolls, dists, sq, masks).
            per_row = wp * (2 * (3 * in_bytes + c_const * cst_bytes) + 48)
            h_tile = max(16, (vmem_budget // 2) // per_row)
        ht = max(16, min(_round_up(int(h_tile), 16), 1024))
        if h >= 16:
            ht = min(ht, (h // 16) * 16)   # keep blocks no taller than the image
        num_h = -(-h // ht)

        scale = 1.0 / float(n * h * w)
        kernel = _make_gradient_loss_kernel(ht, wp, h, w, scale, has_weight)

        scratch = [pltpu.VMEM((8, wp), jnp.float32),             # accumulator
                   pltpu.VMEM((1, wp), jnp.float32),             # carried gray row
                   pltpu.VMEM((1, wp), jnp.float32)]             # carried cy row
        if has_weight:
            scratch.append(pltpu.VMEM((1, wp), jnp.float32))     # carried w row

        self._loss = pl.pallas_call(
            kernel,
            out_shape=jax.ShapeDtypeStruct((n, 1, 1), jnp.float32),
            grid_spec=pltpu.PrefetchScalarGridSpec(
                num_scalar_prefetch=0,
                grid=(n, num_h),
                in_specs=[
                    # current H-tile of the raw (unpadded) input image
                    pl.BlockSpec((pl.Squeezed(), 3, ht, wp),
                                 lambda i, j: (i, 0, j, 0)),
                    # matching tile of the packed constants (cx, cy[, w])
                    pl.BlockSpec((pl.Squeezed(), c_const, ht, wp),
                                 lambda i, j: (i, 0, j, 0)),
                ],
                out_specs=pl.BlockSpec((1, 1, 1), lambda i, j: (i, 0, 0)),
                scratch_shapes=scratch,
            ),
            compiler_params=pltpu.CompilerParams(
                dimension_semantics=("parallel", "arbitrary"),
                vmem_limit_bytes=vmem_budget,
            ),
        )

    def __call__(self, input_image):
        assert tuple(input_image.shape) == self._shape
        # bf16 by default (no-op if the caller already supplies bf16); the cast is
        # intended to fuse into the producer of the image in a real training loop.
        x = jnp.asarray(input_image, self._input_dtype)
        partials = self._loss(x, self._consts)                   # (N, 1, 1)
        return jnp.sum(partials)


# ---------------------------- references (pure JAX) ---------------------------

def _reference_loss_folded(x, cx, cy, w):
    """Folded-form reference using exactly the buffers the kernel consumes."""
    x = jnp.asarray(x, jnp.float32)
    gray = _R * x[:, 0] + _G * x[:, 1] + _B * x[:, 2]
    xd, yd = _replicate_shift_diffs(gray)
    return jnp.mean(((xd - cx) ** 2 + (yd - cy) ** 2) * w)


def _reference_loss_spec(x, content_x_diff, content_y_diff, sky_mask):
    """Literal transcription of the PyTorch forward (f32 buffers)."""
    x = jnp.asarray(x, jnp.float32)
    gray = _R * x[:, 0] + _G * x[:, 1] + _B * x[:, 2]
    xd, yd = _replicate_shift_diffs(gray)
    x_dist, y_dist = xd - content_x_diff, yd - content_y_diff
    global_dist = jnp.mean(x_dist ** 2 + y_dist ** 2)
    sky_dist = jnp.mean((x_dist * sky_mask) ** 2 + (y_dist * sky_mask) ** 2)
    return global_dist + sky_dist


if __name__ == "__main__":
    key = jax.random.PRNGKey(0)
    k1, k2, k3 = jax.random.split(key, 3)

    # Small but non-trivial shapes: H not a multiple of the 16-row tile and W not
    # a multiple of 128 -> exercises partial boundary blocks, the iota masks and
    # the cross-tile row-carry path.
    N, C, H, W = 2, 3, 40, 136
    content = jax.random.uniform(k1, (N, C, H, W), dtype=jnp.float32)
    inp = jax.random.uniform(k2, (N, C, H, W), dtype=jnp.float32)
    s_mask = (jax.random.uniform(k3, (N, H, W)) > 0.5).astype(jnp.float32)

    # Weighted (sky mask) variant, forced small tile -> 3 H tiles, 1 partial.
    loss_mod = GradientLoss(content, s_mask, s_weight=1.0, h_tile=16)
    out = jax.block_until_ready(loss_mod(inp))

    # Tight check: reference built from the exact bf16-rounded buffers the kernel
    # consumes (input + constants), with all math in f32.
    x_q = inp.astype(jnp.bfloat16).astype(jnp.float32)
    cx_q = loss_mod._consts[:, 0].astype(jnp.float32)
    cy_q = loss_mod._consts[:, 1].astype(jnp.float32)
    w_q = loss_mod._consts[:, 2].astype(jnp.float32)
    ref_tight = _reference_loss_folded(x_q, cx_q, cy_q, w_q)
    assert jnp.allclose(out, ref_tight, atol=1e-5, rtol=1e-4), (out, ref_tight)

    # Loose check: literal PyTorch-forward semantics in f32 (bf16 input/constant
    # storage only introduces sub-percent error on this loss).
    ref_spec = _reference_loss_spec(inp, loss_mod.content_x_diff,
                                    loss_mod.content_y_diff, loss_mod.sky_mask)
    assert jnp.allclose(out, ref_spec, rtol=5e-2, atol=1e-3), (out, ref_spec)

    # Unmasked specialisation (weight plane omitted) with auto tile size.
    loss_nw = GradientLoss(content, None)
    out_nw = jax.block_until_ready(loss_nw(inp))
    cxn = loss_nw._consts[:, 0].astype(jnp.float32)
    cyn = loss_nw._consts[:, 1].astype(jnp.float32)
    ref_nw = _reference_loss_folded(x_q, cxn, cyn, jnp.ones((N, H, W), jnp.float32))
    assert jnp.allclose(out_nw, ref_nw, atol=1e-5, rtol=1e-4), (out_nw, ref_nw)

    print("KERNEL_OK")
</pallas_src>

<mosaic_0001>
module attributes {stable_mosaic.version = 11 : i64} {
  func.func @kernel(%arg0: i32, %arg1: i32, %arg2: memref<1x3x16x256xbf16, #tpu.memory_space<vmem>>, %arg3: memref<1x3x16x256xbf16, #tpu.memory_space<vmem>>, %arg4: memref<1x1x1xf32, #tpu.memory_space<vmem>>, %arg5: memref<8x256xf32, #tpu.memory_space<vmem>>, %arg6: memref<1x256xf32, #tpu.memory_space<vmem>>, %arg7: memref<1x256xf32, #tpu.memory_space<vmem>>, %arg8: memref<1x256xf32, #tpu.memory_space<vmem>>) attributes {dimension_semantics = [#tpu.dimension_semantics<parallel>, #tpu.dimension_semantics<arbitrary>], iteration_bounds = array<i64: 2, 3>, scalar_prefetch = 0 : i64, scratch_operands = 4 : i64, tpu.core_type = #tpu.core_type<tc>, window_params = [{transform_indices = @transform_0, window_bounds = array<i64: 1, 3, 16, 256>}, {transform_indices = @transform_1, window_bounds = array<i64: 1, 3, 16, 256>}, {transform_indices = @transform_2, window_bounds = array<i64: 1, 1, 1>}]} {
    %c0_i32 = arith.constant 0 : i32
    %0 = arith.cmpi eq, %arg1, %c0_i32 : i32
    %1 = arith.extui %0 : i1 to i32
    %c0_i32_0 = arith.constant 0 : i32
    %2 = arith.cmpi ne, %1, %c0_i32_0 : i32
    scf.if %2 {
      %cst_41 = arith.constant 0.000000e+00 : f32
      %84 = vector.broadcast %cst_41 : f32 to vector<8x256xf32>
      %c0_42 = arith.constant 0 : index
      %c0_43 = arith.constant 0 : index
      %85 = vector.load %arg5[%c0_42, %c0_43] : memref<8x256xf32, #tpu.memory_space<vmem>>, vector<8x256xf32>
      tpu.vector_store %arg5[%c0_42, %c0_43], %84 {strides = array<i32>} : memref<8x256xf32, #tpu.memory_space<vmem>>, vector<8x256xf32>,
    } else {
    }
    %c0 = arith.constant 0 : index
    %c0_1 = arith.constant 0 : index
    %c0_2 = arith.constant 0 : index
    %c0_3 = arith.constant 0 : index
    %3 = vector.load %arg2[%c0, %c0_1, %c0_2, %c0_3] : memref<1x3x16x256xbf16, #tpu.memory_space<vmem>>, vector<1x1x16x256xbf16>
    %4 = vector.shape_cast %3 : vector<1x1x16x256xbf16> to vector<16x256xbf16>
    %5 = arith.extf %4 : vector<16x256xbf16> to vector<16x256xf32>
    %cst = arith.constant 2.989000e-01 : f32
    %6 = vector.broadcast %cst : f32 to vector<16x256xf32>
    %7 = arith.mulf %6, %5 : vector<16x256xf32>
    %c0_4 = arith.constant 0 : index
    %c1 = arith.constant 1 : index
    %c0_5 = arith.constant 0 : index
    %c0_6 = arith.constant 0 : index
    %8 = vector.load %arg2[%c0_4, %c1, %c0_5, %c0_6] : memref<1x3x16x256xbf16, #tpu.memory_space<vmem>>, vector<1x1x16x256xbf16>
    %9 = vector.shape_cast %8 : vector<1x1x16x256xbf16> to vector<16x256xbf16>
    %10 = arith.extf %9 : vector<16x256xbf16> to vector<16x256xf32>
    %cst_7 = arith.constant 5.870000e-01 : f32
    %11 = vector.broadcast %cst_7 : f32 to vector<16x256xf32>
    %12 = arith.mulf %11, %10 : vector<16x256xf32>
    %13 = arith.addf %7, %12 : vector<16x256xf32>
    %c0_8 = arith.constant 0 : index
    %c2 = arith.constant 2 : index
    %c0_9 = arith.constant 0 : index
    %c0_10 = arith.constant 0 : index
    %14 = vector.load %arg2[%c0_8, %c2, %c0_9, %c0_10] : memref<1x3x16x256xbf16, #tpu.memory_space<vmem>>, vector<1x1x16x256xbf16>
    %15 = vector.shape_cast %14 : vector<1x1x16x256xbf16> to vector<16x256xbf16>
    %16 = arith.extf %15 : vector<16x256xbf16> to vector<16x256xf32>
    %cst_11 = arith.constant 1.140000e-01 : f32
    %17 = vector.broadcast %cst_11 : f32 to vector<16x256xf32>
    %18 = arith.mulf %17, %16 : vector<16x256xf32>
    %19 = arith.addf %13, %18 : vector<16x256xf32>
    %20 = tpu.iota {dimensions = array<i32: 1>} : vector<1x256xi32>
    %21 = tpu.iota {dimensions = array<i32: 0>} : vector<16x1xi32>
    %c16_i32 = arith.constant 16 : i32
    %22 = arith.muli %arg1, %c16_i32 : i32
    %23 = vector.broadcast %22 : i32 to vector<16x1xi32>
    %24 = arith.addi %23, %21 : vector<16x1xi32>
    %c0_i32_12 = arith.constant 0 : i32
    %25 = arith.cmpi sgt, %arg1, %c0_i32_12 : i32
    %26 = arith.extui %25 : i1 to i32
    %c0_i32_13 = arith.constant 0 : i32
    %27 = arith.cmpi ne, %26, %c0_i32_13 : i32
    scf.if %27 {
      %84 = vector.extract_strided_slice %19 {offsets = [0, 0], sizes = [1, 256], strides = [1, 1]} : vector<16x256xf32> to vector<1x256xf32>
      %c0_41 = arith.constant 0 : index
      %c0_42 = arith.constant 0 : index
      %85 = vector.load %arg6[%c0_41, %c0_42] : memref<1x256xf32, #tpu.memory_space<vmem>>, vector<1x256xf32>
      %86 = arith.subf %84, %85 : vector<1x256xf32>
      %c0_43 = arith.constant 0 : index
      %c0_44 = arith.constant 0 : index
      %87 = vector.load %arg7[%c0_43, %c0_44] : memref<1x256xf32, #tpu.memory_space<vmem>>, vector<1x256xf32>
      %88 = arith.subf %86, %87 : vector<1x256xf32>
      %89 = arith.mulf %88, %88 : vector<1x256xf32>
      %c0_45 = arith.constant 0 : index
      %c0_46 = arith.constant 0 : index
      %90 = vector.load %arg8[%c0_45, %c0_46] : memref<1x256xf32, #tpu.memory_space<vmem>>, vector<1x256xf32>
      %91 = arith.mulf %89, %90 : vector<1x256xf32>
      %c0_47 = arith.constant 0 : index
      %c0_48 = arith.constant 0 : index
      %92 = vector.load %arg5[%c0_47, %c0_48] : memref<8x256xf32, #tpu.memory_space<vmem>>, vector<1x256xf32>
      %c136_i32_49 = arith.constant 136 : i32
      %93 = vector.broadcast %c136_i32_49 : i32 to vector<1x256xi32>
      %94 = arith.cmpi slt, %20, %93 : vector<1x256xi32>
      %cst_50 = arith.constant 0.000000e+00 : f32
      %95 = vector.broadcast %cst_50 : f32 to vector<1x256xf32>
      %96 = arith.select %94, %91, %95 : vector<1x256xi1>, vector<1x256xf32>
      %97 = arith.addf %92, %96 : vector<1x256xf32>
      %c0_51 = arith.constant 0 : index
      %c0_52 = arith.constant 0 : index
      %98 = vector.load %arg5[%c0_51, %c0_52] : memref<8x256xf32, #tpu.memory_space<vmem>>, vector<1x256xf32>
      tpu.vector_store %arg5[%c0_51, %c0_52], %97 {strides = array<i32>} : memref<8x256xf32, #tpu.memory_space<vmem>>, vector<1x256xf32>,
    } else {
    }
    %c0_14 = arith.constant 0 : index
    %c0_15 = arith.constant 0 : index
    %c0_16 = arith.constant 0 : index
    %c0_17 = arith.constant 0 : index
    %28 = vector.load %arg3[%c0_14, %c0_15, %c0_16, %c0_17] : memref<1x3x16x256xbf16, #tpu.memory_space<vmem>>, vector<1x1x16x256xbf16>
    %29 = vector.shape_cast %28 : vector<1x1x16x256xbf16> to vector<16x256xbf16>
    %30 = arith.extf %29 : vector<16x256xbf16> to vector<16x256xf32>
    %c0_18 = arith.constant 0 : index
    %c1_19 = arith.constant 1 : index
    %c0_20 = arith.constant 0 : index
    %c0_21 = arith.constant 0 : index
    %31 = vector.load %arg3[%c0_18, %c1_19, %c0_20, %c0_21] : memref<1x3x16x256xbf16, #tpu.memory_space<vmem>>, vector<1x1x16x256xbf16>
    %32 = vector.shape_cast %31 : vector<1x1x16x256xbf16> to vector<16x256xbf16>
    %33 = arith.extf %32 : vector<16x256xbf16> to vector<16x256xf32>
    %c0_22 = arith.constant 0 : index
    %c2_23 = arith.constant 2 : index
    %c0_24 = arith.constant 0 : index
    %c0_25 = arith.constant 0 : index
    %34 = vector.load %arg3[%c0_22, %c2_23, %c0_24, %c0_25] : memref<1x3x16x256xbf16, #tpu.memory_space<vmem>>, vector<1x1x16x256xbf16>
    %35 = vector.shape_cast %34 : vector<1x1x16x256xbf16> to vector<16x256xbf16>
    %36 = arith.extf %35 : vector<16x256xbf16> to vector<16x256xf32>
    %c255_i32 = arith.constant 255 : i32
    %37 = tpu.dynamic_rotate %19 by %c255_i32 dim 1 : vector<16x256xf32>, i32 -> vector<16x256xf32>
    %38 = arith.subf %37, %19 : vector<16x256xf32>
    %39 = arith.subf %38, %30 : vector<16x256xf32>
    %c15_i32 = arith.constant 15 : i32
    %40 = tpu.dynamic_rotate %19 by %c15_i32 dim 0 : vector<16x256xf32>, i32 -> vector<16x256xf32>
    %41 = arith.subf %40, %19 : vector<16x256xf32>
    %42 = arith.subf %41, %33 : vector<16x256xf32>
    %c135_i32 = arith.constant 135 : i32
    %43 = vector.broadcast %c135_i32 : i32 to vector<1x256xi32>
    %44 = arith.cmpi slt, %20, %43 : vector<1x256xi32>
    %c40_i32 = arith.constant 40 : i32
    %45 = vector.broadcast %c40_i32 : i32 to vector<16x1xi32>
    %46 = arith.cmpi slt, %24, %45 : vector<16x1xi32>
    %47 = vector.broadcast %44 : vector<1x256xi1> to vector<16x256xi1>
    %48 = vector.broadcast %46 : vector<16x1xi1> to vector<16x256xi1>
    %49 = arith.andi %47, %48 : vector<16x256xi1>
    %c136_i32 = arith.constant 136 : i32
    %50 = vector.broadcast %c136_i32 : i32 to vector<1x256xi32>
    %51 = arith.cmpi slt, %20, %50 : vector<1x256xi32>
    %c39_i32 = arith.constant 39 : i32
    %52 = vector.broadcast %c39_i32 : i32 to vector<16x1xi32>
    %53 = arith.cmpi slt, %24, %52 : vector<16x1xi32>
    %54 = vector.broadcast %51 : vector<1x256xi1> to vector<16x256xi1>
    %55 = vector.broadcast %53 : vector<16x1xi1> to vector<16x256xi1>
    %56 = arith.andi %54, %55 : vector<16x256xi1>
    %c15_i32_26 = arith.constant 15 : i32
    %57 = vector.broadcast %c15_i32_26 : i32 to vector<16x1xi32>
    %58 = arith.cmpi slt, %21, %57 : vector<16x1xi32>
    %59 = vector.broadcast %58 : vector<16x1xi1> to vector<16x256xi1>
    %60 = arith.andi %56, %59 : vector<16x256xi1>
    %61 = arith.mulf %39, %39 : vector<16x256xf32>
    %62 = arith.mulf %61, %36 : vector<16x256xf32>
    %cst_27 = arith.constant 0.000000e+00 : f32
    %63 = vector.broadcast %cst_27 : f32 to vector<16x256xf32>
    %64 = arith.select %49, %62, %63 : vector<16x256xi1>, vector<16x256xf32>
    %65 = arith.mulf %42, %42 : vector<16x256xf32>
    %66 = arith.mulf %65, %36 : vector<16x256xf32>
    %cst_28 = arith.constant 0.000000e+00 : f32
    %67 = vector.broadcast %cst_28 : f32 to vector<16x256xf32>
    %68 = arith.select %60, %66, %67 : vector<16x256xi1>, vector<16x256xf32>
    %69 = arith.addf %64, %68 : vector<16x256xf32>
    %c0_29 = arith.constant 0 : index
    %c0_30 = arith.constant 0 : index
    %70 = vector.load %arg5[%c0_29, %c0_30] : memref<8x256xf32, #tpu.memory_space<vmem>>, vector<8x256xf32>
    %71 = vector.shape_cast %69 : vector<16x256xf32> to vector<2x8x256xf32>
    %cst_31 = arith.constant dense<0.000000e+00> : vector<8x256xf32>
    %72 = vector.multi_reduction <add>, %71, %cst_31 [0] : vector<2x8x256xf32> to vector<8x256xf32>
    %73 = arith.addf %70, %72 : vector<8x256xf32>
    %c0_32 = arith.constant 0 : index
    %c0_33 = arith.constant 0 : index
    %74 = vector.load %arg5[%c0_32, %c0_33] : memref<8x256xf32, #tpu.memory_space<vmem>>, vector<8x256xf32>
    tpu.vector_store %arg5[%c0_32, %c0_33], %73 {strides = array<i32>} : memref<8x256xf32, #tpu.memory_space<vmem>>, vector<8x256xf32>,
    %75 = vector.extract_strided_slice %19 {offsets = [15, 0], sizes = [1, 256], strides = [1, 1]} : vector<16x256xf32> to vector<1x256xf32>
    %c0_34 = arith.constant 0 : index
    %c0_35 = arith.constant 0 : index
    %76 = vector.load %arg6[%c0_34, %c0_35] : memref<1x256xf32, #tpu.memory_space<vmem>>, vector<1x256xf32>
    tpu.vector_store %arg6[%c0_34, %c0_35], %75 {strides = array<i32>} : memref<1x256xf32, #tpu.memory_space<vmem>>, vector<1x256xf32>,
    %77 = vector.extract_strided_slice %33 {offsets = [15, 0], sizes = [1, 256], strides = [1, 1]} : vector<16x256xf32> to vector<1x256xf32>
    %c0_36 = arith.constant 0 : index
    %c0_37 = arith.constant 0 : index
    %78 = vector.load %arg7[%c0_36, %c0_37] : memref<1x256xf32, #tpu.memory_space<vmem>>, vector<1x256xf32>
    tpu.vector_store %arg7[%c0_36, %c0_37], %77 {strides = array<i32>} : memref<1x256xf32, #tpu.memory_space<vmem>>, vector<1x256xf32>,
    %79 = vector.extract_strided_slice %36 {offsets = [15, 0], sizes = [1, 256], strides = [1, 1]} : vector<16x256xf32> to vector<1x256xf32>
    %c0_38 = arith.constant 0 : index
    %c0_39 = arith.constant 0 : index
    %80 = vector.load %arg8[%c0_38, %c0_39] : memref<1x256xf32, #tpu.memory_space<vmem>>, vector<1x256xf32>
    tpu.vector_store %arg8[%c0_38, %c0_39], %79 {strides = array<i32>} : memref<1x256xf32, #tpu.memory_space<vmem>>, vector<1x256xf32>,
    %c2_i32 = arith.constant 2 : i32
    %81 = arith.cmpi eq, %arg1, %c2_i32 : i32
    %82 = arith.extui %81 : i1 to i32
    %c0_i32_40 = arith.constant 0 : i32
    %83 = arith.cmpi ne, %82, %c0_i32_40 : i32
    scf.if %83 {
      %c0_41 = arith.constant 0 : index
      %c0_42 = arith.constant 0 : index
      %84 = vector.load %arg5[%c0_41, %c0_42] : memref<8x256xf32, #tpu.memory_space<vmem>>, vector<8x256xf32>
      %85 = vector.shape_cast %84 : vector<8x256xf32> to vector<1x8x256xf32>
      %cst_43 = arith.constant dense<0.000000e+00> : vector<1xf32>
      %86 = vector.multi_reduction <add>, %85, %cst_43 [1, 2] : vector<1x8x256xf32> to vector<1xf32>
      %87 = vector.shape_cast %86 : vector<1xf32> to vector<1x1x1xf32>
      %88 = vector.extract %87[0, 0, 0] : f32 from vector<1x1x1xf32>
      %cst_44 = arith.constant 9.19117665E-5 : f32
      %89 = arith.mulf %88, %cst_44 : f32
      %90 = vector.broadcast %89 : f32 to vector<1x1x1xf32>
      %c0_45 = arith.constant 0 : index
      %c0_46 = arith.constant 0 : index
      %c0_47 = arith.constant 0 : index
      %91 = vector.load %arg4[%c0_45, %c0_46, %c0_47] : memref<1x1x1xf32, #tpu.memory_space<vmem>>, vector<1x1x1xf32>
      tpu.vector_store %arg4[%c0_45, %c0_46, %c0_47], %90 {strides = array<i32>} : memref<1x1x1xf32, #tpu.memory_space<vmem>>, vector<1x1x1xf32>,
    } else {
    }
    return
  }
  func.func @transform_0(%arg0: i32, %arg1: i32) -> (i32, i32, i32, i32) {
    %c0_i32 = arith.constant 0 : i32
    %c0_i32_0 = arith.constant 0 : i32
    %c0_i32_1 = arith.constant 0 : i32
    return %arg0, %c0_i32, %arg1, %c0_i32_0 : i32, i32, i32, i32
  }
  func.func @transform_1(%arg0: i32, %arg1: i32) -> (i32, i32, i32, i32) {
    %c0_i32 = arith.constant 0 : i32
    %c0_i32_0 = arith.constant 0 : i32
    %c0_i32_1 = arith.constant 0 : i32
    return %arg0, %c0_i32, %arg1, %c0_i32_0 : i32, i32, i32, i32
  }
  func.func @transform_2(%arg0: i32, %arg1: i32) -> (i32, i32, i32) {
    %c0_i32 = arith.constant 0 : i32
    %c0_i32_0 = arith.constant 0 : i32
    %c0_i32_1 = arith.constant 0 : i32
    return %arg0, %c0_i32, %c0_i32_0 : i32, i32, i32
  }
}

</mosaic_0001>

<bundles_post_ra>
// kernel: tpu_custom_call.1
= control target key start
LH: loop header
LB: loop body
LE: loop exit
PB: predicated region body
PF: predicated region fallthrough
CT: control target
= control target key end

     0   :  { %7 = vsyncpa [#allocation7], 0  ;;  %s1231_s0 = inlined_call_operand.hbm [shape: bf16[2,3,40,136], index: 0, kind: input, shape index: {}]   ;;  %s1232_s1 = inlined_call_operand.hbm [shape: bf16[2,3,40,136], index: 1, kind: input, shape index: {}]   ;;  %s1233_s2 = inlined_call_operand.vmem [shape: f32[2,1,1], index: 2, kind: output, shape index: {}]  }
   0x1   :  { %9 = vsyncpa [#allocation7 + $0x1], 0 }
   0x2   :  { %10 = vsyncpa [#allocation9], 0 }
   0x3   :  { %12 = vsyncpa [#allocation9 + $0x1], 0  ;;  %s918_s9 = smov 0   ;;  %s920_s10 = smov 0  }
   0x4   :  { %s922_s11 = smov 0   ;;  %s924_s12 = smov 0  }
   0x5   :  { %s926_s13 = smov 0   ;;  %s928_s14 = smov 0  }
   0x6   :  { %s930_s15 = smov 0   ;;  %s932_s16 = smov 0  }
   0x7 LB: > { %s27_s17 = sadd.s32 1, %s881_s14  ;;  %s30_s18 = sadd.s32 1, %s885_s15  ;;  %s889_s16 = sphi %s932_s16, %s18_s16   ;;  %s885_s15 = sphi %s930_s15, %s1262_s15   ;;  %s881_s14 = sphi %s928_s14, %s1261_s14   ;;  %s877_s13 = sphi %s926_s13, %s1260_s13   ;;  %s873_s12 = sphi %s924_s12, %s1259_s12   ;;  %s869_s11 = sphi %s922_s11, %s1258_s11   ;;  %s865_s10 = sphi %s920_s10, %s1257_s10   ;;  %s861_s9 = sphi %s918_s9, %s1256_s9  }
   0x8   : > { %p28_p0 = scmp.ge.s32.totalorder %s27_s17, 3  ;;  %s693_s19 = sadd.s32 4294967295, %s889_s16  }
   0x9   : > { %p46_p1 = scmp.ne.s32.totalorder %s869_s11, %s865_s10  ;;  %p47_p2 = scmp.eq.s32.totalorder %s889_s16, 0 }
   0xa   : > { %s1264_s17 = smov (%p28_p0, %s27_s17), 0  ;;  %s1266_s18 = smov (!%p28_p0, %s30_s18), %s885_s15 }
   0xb   : > { %1236 = sst [smem:[#allocation16_spill]] %s1264_s17  ;;  %s35_s20 = ssub.s32 %s881_s14, %s1264_s17 }
   0xc   : > { %p32_p3 = scmp.ge.s32.totalorder %s1266_s18, 2  ;;  %p52_p4 = scmp.ne.s32.totalorder %s865_s10, %s861_s9 }
   0xd   : > { %p968_p5 = por %p47_p2, %p46_p1  ;;  %p53_p6 = scmp.eq.s32.totalorder %s693_s19, 0 }
   0xe   : > { %s1268_s18 = smov (%p32_p3, %s1266_s18), 0  ;;  %s39_s25 = sadd.s32 1, %s869_s11 }
   0xf   : > { %1238 = sst [smem:[#allocation17_spill]] %s1268_s18  ;;  %p974_p7 = por %p53_p6, %p52_p4 }
  0x10   : > { %s34_s23 = ssub.s32 %s885_s15, %s1268_s18  ;;  %p696_p9 = scmp.ge.s32.totalorder %s889_s16, 6 }
  0x11   : > { %s36_s24 = sor.u32 %s35_s20, %s34_s23 }
  0x12   : > { %p37_p8 = scmp.eq.s32.totalorder %s36_s24, 0  ;;  %126 = sbr.rel (%p696_p9) target bundleno = 77 (0x4d), region = 16 }
  0x14   : > { %s982_s26 = scalar_select %p37_p8, %s869_s11, %s39_s25  }
  0x16   : > { %1240 = sst [smem:[#allocation18_spill]] %s982_s26 }
  0x17   : > { %129 = sbr.rel (!%p968_p5) target bundleno = 50 (0x32), region = 20 }
  0x1c   : > { %s130_s27 = sand.u32 1, %s869_s11   ;;  %s697_s28 = sshll.u32 %s881_s14, 1 }
  0x1d   : > { %s734_s29 = smul.u32 48, %s130_s27  ;;  %s136_s30 = ssub.s32 5, %s697_s28 }
  0x1e   : > { %p137_p10 = scmp.lt.s32.totalorder %s136_s30, 2  ;;  %s992_s6 = scalar_lea.sflag [#allocation7], %s130_s27 }
  0x1f   : > { %s134_s7 = scalar_lea.vmem [#allocation6], %s734_s29 }
  0x20   : > { %s1270_s30 = smov (!%p137_p10, %s136_s30), 2 }
  0x21   : > { %s698_s3 = smul.u32 24, %s1270_s30 }
  0x23   : > { %s141_s4 = ssub.s32 48, %s698_s3 }
  0x24   : > { %s142_s5 = sshll.u32 %s141_s4, 4 }
  0x25   : > { %143 = vsyncadd %s992_s6, %s142_s5  ;;  %p995_p11 = scmp.ne.s32.totalorder %s698_s3, 0  ;;  %s732_s9 = sshll.u32 %s881_s14, 2 }
  0x26   : > { %s735_s19 = smul.u32 30, %s885_s15  ;;  %s156_s20 = sld [smem:[#allocation0]]  }
  0x27   : > { %s166_s23 = sshll.u32 %s134_s7, 4  ;;  %s706_s24 = smul.u32 384, %s1270_s30  ;;  %s167_s23 = int_to_ptr.vmem [resolvable:$true] %s166_s23 }
  0x28   : > { %s147_s25 = sadd.s32 %s735_s19, %s732_s9  ;;  %s891_s5 = smov 640  }
  0x29   : > { %s701_s27 = sshll.u32 %s147_s25, 2  ;;  %173 = sst [smem:[#allocation11]] %s891_s5 }
  0x2a   : > { %s149_s29 = scalar_lea.hbm %s1231_s0, %s701_s27  ;;  %s892_s26 = smov 256  }
  0x2b   : > { %s164_s3 = sshll.u32 %s149_s29, 4  ;;  %175 = sst [smem:[#allocation11 + $0x1]] %s892_s26  ;;  %s165_s3 = int_to_ptr.hbm [resolvable:$true] %s164_s3 }
  0x2c   : > { %s704_s18 = sshll.u32 %s156_s20, 26  ;;  %177 = sst [smem:[#allocation11 + $0x2]] %s1270_s30 }
  0x2d   : > { %s705_s17 = sadd.s32 134217728, %s704_s18  ;;  %s893_s7 = smov 128  }
  0x2e   : > { %179 = sst [smem:[#allocation11 + $0x3]] %s893_s7  ;;  %s894_s9 = smov 8  }
  0x2f   : > { %181 = sst [smem:[#allocation11 + $0x4]] %s893_s7  ;;  %s895_s19 = smov [#allocation10]  }
  0x30   : > { %183 = sst [smem:[#allocation11 + $0x5]] %s894_s9 }
  0x31   : > { %185 = dma.general (%p995_p11), %s165_s3, %s706_s24, %s167_s23, %s992_s6, %s895_s19, [#allocation11], %s705_s17, 0  }
  0x32 PF: > { %188 = sbr.rel (!%p968_p5) target bundleno = 77 (0x4d), region = 24 }
  0x37   : > { %s189_s20 = sand.u32 1, %s869_s11   ;;  %s707_s25 = sshll.u32 %s881_s14, 1 }
  0x38   : > { %s736_s18 = smul.u32 48, %s189_s20  ;;  %s195_s27 = ssub.s32 5, %s707_s25 }
  0x39   : > { %p196_p12 = scmp.lt.s32.totalorder %s195_s27, 2  ;;  %s1016_s4 = scalar_lea.sflag [#allocation9], %s189_s20 }
  0x3a   : > { %s193_s17 = scalar_lea.vmem [#allocation8], %s736_s18 }
  0x3b   : > { %s1272_s27 = smov (!%p196_p12, %s195_s27), 2 }
  0x3c   : > { %s708_s26 = smul.u32 24, %s1272_s27 }
  0x3e   : > { %s200_s30 = ssub.s32 48, %s708_s26 }
  0x3f   : > { %s201_s28 = sshll.u32 %s200_s30, 4 }
  0x40   : > { %202 = vsyncadd %s1016_s4, %s201_s28  ;;  %p1019_p13 = scmp.ne.s32.totalorder %s708_s26, 0  ;;  %s733_s6 = sshll.u32 %s881_s14, 2 }
  0x41   : > { %s737_s8 = smul.u32 30, %s885_s15  ;;  %s215_s23 = sld [smem:[#allocation0]]  }
  0x42   : > { %s225_s24 = sshll.u32 %s193_s17, 4  ;;  %s716_s29 = smul.u32 384, %s1272_s27  ;;  %s226_s24 = int_to_ptr.vmem [resolvable:$true] %s225_s24 }
  0x43   : > { %s206_s5 = sadd.s32 %s737_s8, %s733_s6  ;;  %s896_s20 = smov 640  }
  0x44   : > { %s711_s3 = sshll.u32 %s206_s5, 2  ;;  %232 = sst [smem:[#allocation13]] %s896_s20 }
  0x45   : > { %s208_s19 = scalar_lea.hbm %s1232_s1, %s711_s3  ;;  %s897_s30 = smov 256  }
  0x46   : > { %s223_s25 = sshll.u32 %s208_s19, 4  ;;  %234 = sst [smem:[#allocation13 + $0x1]] %s897_s30  ;;  %s224_s25 = int_to_ptr.hbm [resolvable:$true] %s223_s25 }
  0x47   : > { %s714_s18 = sshll.u32 %s215_s23, 26  ;;  %236 = sst [smem:[#allocation13 + $0x2]] %s1272_s27 }
  0x48   : > { %s715_s26 = sadd.s32 134217728, %s714_s18  ;;  %s898_s28 = smov 128  }
  0x49   : > { %238 = sst [smem:[#allocation13 + $0x3]] %s898_s28  ;;  %s899_s17 = smov 8  }
  0x4a   : > { %240 = sst [smem:[#allocation13 + $0x4]] %s898_s28  ;;  %s900_s6 = smov [#allocation12]  }
  0x4b   : > { %242 = sst [smem:[#allocation13 + $0x5]] %s899_s17 }
  0x4c   : > { %244 = dma.general (%p1019_p13), %s224_s25, %s716_s29, %s226_s24, %s1016_s4, %s900_s6, [#allocation13], %s715_s26, 0  }
  0x4d PF: > { %p717_p0 = scmp.ge.s32.totalorder %s889_s16, 1  ;;  %p246_p1 = scmp.lt.s32.totalorder %s889_s16, 7 }
  0x4f   : > { %p247_p2 = pnand %p717_p0, %p246_p1 }
  0x50   : > { %s252_s8 = sand.u32 (!%p247_p2), 1, %s865_s10  }
  0x51   : > { %250 = sbr.rel (%p247_p2) target bundleno = 463 (0x1cf), region = 28  ;;  %s253_s23 = scalar_lea.sflag (!%p247_p2), [#allocation7], %s252_s8 }
  0x52   : > { %s738_s27 = smul.u32 (!%p247_p2), 48, %s252_s8 }
  0x54   : > { %s256_s5 = scalar_lea.vmem (!%p247_p2), [#allocation6], %s738_s27 }
  0x56   : > { %852 = dma.done.wait (%p974_p7), %s253_s23, 768  }
  0x57   : > { %854 = vsyncadd (%p974_p7), %s253_s23, 4294966528  ;;  %s263_s4 = scalar_lea.sflag [#allocation9], %s252_s8  ;;  %s1040_s21 = scalar_lea.vmem [#allocation8], %s738_s27 }
  0x58   : > { %856 = dma.done.wait (%p974_p7), %s263_s4, 768  }
  0x59   : > { %858 = vsyncadd (%p974_p7), %s263_s4, 4294966528  ;;  %p303_p3 = scmp.lt.s32.totalorder %s877_s13, 1  ;;  %p718_p4 = scmp.ne.s32.totalorder %s873_s12, 0 }
  0x5b   : > { %s1274_s13 = smov (!%p303_p3, %s877_s13), 1  ;;  %309 = sbr.rel (%p718_p4) target bundleno = 99 (0x63), region = 40 }
  0x5c   : > { %s305_s3 = scalar_lea.vmem %s1233_s2, %s1274_s13 }
  0x60   : > { %v901_v0 = vmov 0.0  }
  0x61   : > { %310 = vst [vmem:[#allocation2] sm:$0xff] %v901_v0 }
  0x62   : > { %311 = vst [vmem:[#allocation2 + $0x8] sm:$0xff] %v901_v0 }
  0x63 PF: > { %v312_v1 = vld [vmem:[%s256_s5] sm:$0xff]  ;;  %v313_v2 = vld [vmem:[%s256_s5 + $0x8] sm:$0xff]  ;;  %v719_v3 = vld [vmem:[%s256_s5 + $0x10] sm:$0xff]  ;;  %v352_v4 = vlaneseq  ;;  %s723_s22 = sshll.u32 %s873_s12, 4  ;;  %p724_p5 = scmp.le.s32.totalorder %s873_s12, 0 }
  0x64   : > { %v314_v5 = vunpack.c.l.bf16 %v312_v1  ;;  %v315_v6 = vunpack.c.h.bf16 %v312_v1  ;;  %v316_v7 = vunpack.c.l.bf16 %v313_v2  ;;  %v317_v8 = vunpack.c.h.bf16 %v313_v2  ;;  %v720_v9 = vld [vmem:[%s256_s5 + $0x18] sm:$0xff]  ;;  %v721_v10 = vld [vmem:[%s256_s5 + $0x20] sm:$0xff]  ;;  %v722_v15 = vld [vmem:[%s256_s5 + $0x28] sm:$0xff] }
  0x65   : > { %v325_v11 = vunpack.c.l.bf16 %v719_v3  ;;  %v326_v12 = vunpack.c.h.bf16 %v719_v3  ;;  %v327_v13 = vunpack.c.l.bf16 %v720_v9  ;;  %v328_v14 = vunpack.c.h.bf16 %v720_v9 }
  0x66   : > { %v318_v16 = vmul.f32 0.2989, %v314_v5  ;;  %v319_v17 = vmul.f32 0.2989, %v315_v6  ;;  %v320_v18 = vmul.f32 0.2989, %v316_v7  ;;  %v340_v19 = vunpack.c.l.bf16 %v721_v10 }
  0x67   : > { %v321_v20 = vmul.f32 0.2989, %v317_v8  ;;  %v329_v21 = vmul.f32 0.587, %v325_v11  ;;  %v330_v22 = vmul.f32 0.587, %v326_v12  ;;  %v341_v23 = vunpack.c.h.bf16 %v721_v10 }
  0x68   : > { %v331_v24 = vmul.f32 0.587, %v327_v13  ;;  %v332_v25 = vmul.f32 0.587, %v328_v14  ;;  %v342_v26 = vunpack.c.l.bf16 %v722_v15  ;;  %v343_v27 = vunpack.c.h.bf16 %v722_v15 }
  0x69   : > { %v333_v28 = vadd.f32 %v329_v21, %v318_v16  ;;  %v334_v29 = vadd.f32 %v330_v22, %v319_v17  ;;  %v344_v30 = vmul.f32 0.114, %v340_v19  ;;  %v345_v31 = vmul.f32 0.114, %v341_v23 }
  0x6a   : > { %v335_v32 = vadd.f32 %v331_v24, %v320_v18  ;;  %v336_v33 = vadd.f32 %v332_v25, %v321_v20  ;;  %v346_v34 = vmul.f32 0.114, %v342_v26  ;;  %v347_v35 = vmul.f32 0.114, %v343_v27 }
  0x6b   : > { %v1056_v36 = vadd.f32 %v344_v30, %v333_v28  ;;  %v1058_v37 = vadd.f32 %v345_v31, %v334_v29  ;;  %v1061_v38 = vand.u32 127, %v352_v4  ;;  %v1064_v39 = vshrl.u32 %v352_v4, 7  ;;  %365 = sbr.rel (%p724_p5) target bundleno = 130 (0x82), region = 44 }
  0x6c   : > { %v1066_v40 = vadd.f32 %v346_v34, %v335_v32  ;;  %v1068_v41 = vadd.f32 %v347_v35, %v336_v33  ;;  %v359_v42 = vstv %s723_s22 }
  0x6d   : > { %v1071_v43 = vadd.s32 128, %v1061_v38  ;;  %v1074_v44 = vadd.s32 8, %v1064_v39  ;;  %v1077_v45 = vadd.s32 %v359_v42, %v1064_v39 }
  0x6f   : > { %v1080_v46 = vadd.s32 %v359_v42, %v1074_v44 }
  0x70   : > { %v366_v47 = vld [vmem:[#allocation3] sm:$0x3]  ;;  %v374_v48 = vld [vmem:[#allocation4] sm:$0x3]  ;;  %v384_v53 = vld [vmem:[#allocation5] sm:$0x3] }
  0x71   : > { %v368_v49 = vperm.slane %v366_v47, 0  ;;  %v369_v50 = vperm.slane %v366_v47, 1  ;;  %v376_v51 = vperm.slane %v374_v48, 0  ;;  %v377_v52 = vperm.slane %v374_v48, 1 }
  0x72   : > { %v387_v58 = vperm.slane %v384_v53, 1  ;;  %v386_v59 = vperm.slane %v384_v53, 0  ;;  %vm394_vm0 = vcmp.lt.s32.totalorder %v1071_v43, 136  ;;  %vm400_vm1 = vcmask 1040384  }
  0x73   : > { %v372_v54 = vsub.f32 %v1056_v36, %v368_v49  ;;  %v373_v55 = vsub.f32 %v1058_v37, %v369_v50  ;;  %v392_v1 = vld [vmem:[#allocation2] ss:$8 sm:$0x3]  ;;  %vm406_vm2 = vcmp.lt.s32.totalorder %v352_v4, 256 }
  0x75   : > { %v380_v56 = vsub.f32 %v372_v54, %v376_v51  ;;  %v381_v57 = vsub.f32 %v373_v55, %v377_v52 }
  0x77   : > { %v382_v60 = vmul.f32 %v380_v56, %v380_v56  ;;  %v383_v61 = vmul.f32 %v381_v57, %v381_v57 }
  0x79   : > { %v391_v62 = vmul.f32 %v387_v58, %v383_v61  ;;  %v390_v63 = vmul.f32 %v386_v59, %v382_v60 }
  0x7b   : > { %v396_v0 = vsel %vm394_vm0, %v391_v62, 0.0 }
  0x7c   : > { %v399_v2 = vrot.slane %v396_v0, 7 }
  0x7e   : > { %v401_v3 = vsel %vm400_vm1, %v390_v63, %v399_v2 }
  0x7f   : > { %v403_v5 = vadd.f32 %v401_v3, %v392_v1 }
  0x81   : > { %408 = vst.msk [vmem:[#allocation2] ss:$8 sm:$0x3] %vm406_vm2, %v403_v5 }
  0x82 PF: > { %548 = vst [vmem:[#allocation1] sm:$0xff] %v1066_v40  ;;  %s902_s7 = smov 127   ;;  %v726_v6 = vld [vmem:[%s1040_s21 + $0x18] sm:$0xff]  ;;  %vm1095_vm3 = vcmp.lt.s32.totalorder %v352_v4, 256  ;;  %v728_v11 = vld [vmem:[%s1040_s21 + $0x28] sm:$0xff]  ;;  %v451_v4 = vrot.slane %v1056_v36, 1 }
  0x83   : > { %434 = vrot.lane.b32.xlu1 %v1058_v37, %s902_s7  ;;  %430 = vrot.lane.b32.xlu0 %v1056_v36, %s902_s7  ;;  %549 = vst [vmem:[#allocation1 + $0x9] sm:$0xff] %v1068_v41  ;;  %v421_v7 = vunpack.c.l.bf16 %v726_v6  ;;  %v422_v8 = vunpack.c.h.bf16 %v726_v6  ;;  %v1102_v12 = vunpack.c.l.bf16 %v728_v11  ;;  %v1104_v13 = vunpack.c.h.bf16 %v728_v11  ;;  %v725_v19 = vld [vmem:[%s1040_s21 + $0x10] sm:$0xff]  ;;  %v410_v24 = vld [vmem:[%s1040_s21] sm:$0xff]  ;;  %p729_p6 = scmp.ne.s32.totalorder %s873_s12, 2 }
  0x84   : > { %v453_v15 = vrot.slane %v1066_v40, 1  ;;  %v452_v16 = vrot.slane %v1058_v37, 1  ;;  %v454_v17 = vrot.slane %v1068_v41, 1  ;;  %vm455_vm4 = vcmp.lt.s32.totalorder %v1064_v39, 7  ;;  %v727_v49 = vld [vmem:[%s1040_s21 + $0x20] sm:$0xff]  ;;  %v411_v55 = vld [vmem:[%s1040_s21 + $0x8] sm:$0xff] }
  0x85   : > { %vm438_vm5 = vcmp.lt.s32.totalorder %v1061_v38, 127  ;;  %v419_v26 = vunpack.c.l.bf16 %v725_v19  ;;  %v420_v28 = vunpack.c.h.bf16 %v725_v19  ;;  %v412_v33 = vunpack.c.l.bf16 %v410_v24 }
  0x86   : > { %v456_v18 = vsel %vm455_vm4, %v451_v4, %v453_v15  ;;  %v457_v21 = vsel %vm455_vm4, %v452_v16, %v454_v17  ;;  %v458_v22 = vsel %vm455_vm4, %v453_v15, %v451_v4  ;;  %v459_v23 = vsel %vm455_vm4, %v454_v17, %v452_v16 }
  0x87   : > { %v460_v25 = vsub.f32 %v456_v18, %v1056_v36  ;;  %v461_v27 = vsub.f32 %v457_v21, %v1058_v37  ;;  %v462_v29 = vsub.f32 %v458_v22, %v1066_v40  ;;  %v463_v30 = vsub.f32 %v459_v23, %v1068_v41 }
  0x88   : > { %v413_v34 = vunpack.c.h.bf16 %v410_v24  ;;  %vm485_vm6 = vcmp.lt.s32.totalorder %v1071_v43, 136  ;;  %vm486_vm7 = vcmp.lt.s32.totalorder %v1077_v45, 39  ;;  %v426_v56 = vunpack.c.l.bf16 %v727_v49 }
  0x89   : > { %v464_v48 = vsub.f32 %v460_v25, %v419_v26  ;;  %v465_v50 = vsub.f32 %v461_v27, %v420_v28  ;;  %v466_v51 = vsub.f32 %v462_v29, %v421_v7  ;;  %v467_v52 = vsub.f32 %v463_v30, %v422_v8  ;;  %vm1154_vm13 = vmand %vm485_vm6, %vm486_vm7 }
  0x8a   : > { %v551_v9 = vld [vmem:[#allocation1 + $0x7] ss:$9 sm:$0xff]  ;;  %v427_v57 = vunpack.c.h.bf16 %v727_v49  ;;  %vm487_vm8 = vcmp.lt.s32.totalorder %v1080_v46, 39  ;;  %v414_v59 = vunpack.c.l.bf16 %v411_v55  ;;  %vm501_vm9 = vcmp.lt.s32.totalorder %v1074_v44, 15 }
  0x8b   : > { %436 = vrot.lane.b32.xlu1 %v1068_v41, %s902_s7  ;;  %432 = vrot.lane.b32.xlu0 %v1066_v40, %s902_s7  ;;  %560 = vst [vmem:[#allocation1] sm:$0xff] %v421_v7  ;;  %v522_v58 = vmul.f32 %v464_v48, %v464_v48  ;;  %v525_v60 = vmul.f32 %v467_v52, %v467_v52  ;;  %v415_v1 = vunpack.c.h.bf16 %v411_v55  ;;  %vm469_vm10 = vcmp.lt.s32.totalorder %v1071_v43, 135  ;;  %vm1141_vm11 = vmand %vm485_vm6, %vm487_vm8 }
  0x8c   : > { %561 = vst [vmem:[#allocation1 + $0x9] sm:$0xff] %v422_v8  ;;  %vm470_vm12 = vcmp.lt.s32.totalorder %v1077_v45, 40  ;;  %vm471_vm14 = vcmp.lt.s32.totalorder %v1080_v46, 40  ;;  %vm1165_vm15 = vmand %vm487_vm8, %vm501_vm9 }
  0x8d   : > { %557 = vst.msk [vmem:[#allocation3] sm:$0x3] %vm1095_vm3, %v551_v9  ;;  %v526_v7 = vmul.f32 %v522_v58, %v426_v56  ;;  %vm1175_vm0 = vmand %vm1141_vm11, %vm501_vm9 }
  0x8e   : > { %vm481_vm1 = vmand %vm469_vm10, %vm470_vm12 }
  0x8f   : > { %v530_v19 = vsel %vm486_vm7, %v526_v7, 0.0  ;;  %vm483_vm2 = vmand %vm469_vm10, %vm471_vm14 }
  0x93   : > { %v563_v14 = vld [vmem:[#allocation1 + $0x7] ss:$9 sm:$0xff] }
  0x94   : > { %565 = vst.msk [vmem:[#allocation4] sm:$0x3] %vm1095_vm3, %v563_v14  ;;  %v529_v14 = vmul.f32 %v525_v60, %v1104_v13 }
  0x95   : > { %568 = vst [vmem:[#allocation1] sm:$0xff] %v1102_v12 }
  0x96   : > { %569 = vst [vmem:[#allocation1 + $0x9] sm:$0xff] %v1104_v13  ;;  %v533_v21 = vsel %vm1175_vm0, %v529_v14, 0.0 }
  0x9d   : > { %v571_v20 = vld [vmem:[#allocation1 + $0x7] ss:$9 sm:$0xff] }
  0x9e   : > { %573 = vst.msk [vmem:[#allocation5] sm:$0x3] %vm1095_vm3, %v571_v20 }
  0xf5   : > { %v435_v31 = vpop.permute.xlu1 %434  ;;  %v431_v32 = vpop.permute.xlu0 %430 }
  0xf6   : > { %v439_v35 = vsel %vm438_vm5, %v431_v32, %v435_v31  ;;  %v441_v39 = vsel %vm438_vm5, %v435_v31, %v431_v32  ;;  %v538_v31 = vld [vmem:[#allocation2] sm:$0xff]  ;;  %v539_v32 = vld [vmem:[#allocation2 + $0x8] sm:$0xff] }
  0xf7   : > { %v443_v42 = vsub.f32 %v439_v35, %v1056_v36  ;;  %v444_v47 = vsub.f32 %v441_v39, %v1058_v37  ;;  %v523_v36 = vmul.f32 %v465_v50, %v465_v50  ;;  %v524_v37 = vmul.f32 %v466_v51, %v466_v51 }
  0xf9   : > { %v447_v53 = vsub.f32 %v443_v42, %v412_v33  ;;  %v448_v54 = vsub.f32 %v444_v47, %v413_v34  ;;  %v527_v10 = vmul.f32 %v523_v36, %v427_v57  ;;  %v528_v11 = vmul.f32 %v524_v37, %v1102_v12 }
  0xfb   : > { %v510_v61 = vmul.f32 %v447_v53, %v447_v53  ;;  %v511_v62 = vmul.f32 %v448_v54, %v448_v54  ;;  %v531_v44 = vsel %vm1154_vm13, %v527_v10, 0.0  ;;  %v532_v20 = vsel %vm1165_vm15, %v528_v11, 0.0 }
  0xfd   : > { %v437_v63 = vpop.permute.xlu1 %436  ;;  %v433_v0 = vpop.permute.xlu0 %432  ;;  %v514_v4 = vmul.f32 %v510_v61, %v426_v56  ;;  %v515_v15 = vmul.f32 %v511_v62, %v427_v57 }
  0xfe   : > { %v440_v3 = vsel %vm438_vm5, %v433_v0, %v437_v63  ;;  %v442_v5 = vsel %vm438_vm5, %v437_v63, %v433_v0 }
  0xff   : > { %v445_v8 = vsub.f32 %v440_v3, %v1066_v40  ;;  %v446_v9 = vsub.f32 %v442_v5, %v1068_v41  ;;  %v518_v22 = vsel %vm470_vm12, %v514_v4, 0.0  ;;  %v519_v23 = vsel %vm481_vm1, %v515_v15, 0.0 }
 0x100   : > { %v534_v43 = vadd.f32 %v530_v19, %v518_v22  ;;  %v535_v28 = vadd.f32 %v531_v44, %v519_v23 }
 0x101   : > { %v449_v41 = vsub.f32 %v445_v8, %v414_v59  ;;  %v450_v16 = vsub.f32 %v446_v9, %v415_v1 }
 0x103   : > { %v512_v17 = vmul.f32 %v449_v41, %v449_v41  ;;  %v513_v18 = vmul.f32 %v450_v16, %v450_v16 }
 0x105   : > { %v516_v24 = vmul.f32 %v512_v17, %v1102_v12  ;;  %v517_v25 = vmul.f32 %v513_v18, %v1104_v13 }
 0x107   : > { %v520_v26 = vsel %vm471_vm14, %v516_v24, 0.0  ;;  %v521_v27 = vsel %vm483_vm2, %v517_v25, 0.0 }
 0x108   : > { %v536_v29 = vadd.f32 %v532_v20, %v520_v26  ;;  %v537_v30 = vadd.f32 %v533_v21, %v521_v27 }
 0x10a   : > { %v540_v33 = vadd.f32 %v536_v29, %v534_v43  ;;  %v541_v34 = vadd.f32 %v537_v30, %v535_v28 }
 0x10b   : > { %577 = sbr.rel (%p729_p6) target bundleno = 463 (0x1cf), region = 48 }
 0x10c   : > { %v542_v35 = vadd.f32 %v540_v33, %v538_v31  ;;  %v543_v45 = vadd.f32 %v541_v34, %v539_v32 }
 0x10e   : > { %544 = vst [vmem:[#allocation2] sm:$0xff] %v542_v35 }
 0x10f   : > { %545 = vst [vmem:[#allocation2 + $0x8] sm:$0xff] %v543_v45 }
 0x110   : > { %vm592_vm3 = vcmask 0  }
 0x115   : > { %v578_v12 = vld [vmem:[#allocation2] sm:$0xff] }
 0x116   : > { %v579_v46 = vld [vmem:[#allocation2 + $0x8] sm:$0xff] }
 0x117   : > { %v580_v13 = vadd.f32 %v579_v46, %v578_v12 }
 0x119   : > { %581 = vadd.xlane.f32.xlu0 %v580_v13 }
 0x18c   : > { %v582_v39 = vpop.xlane.xlu0 %581 }
 0x18d   : > { %v583_v42 = vrot.slane %v582_v39, 4 }
 0x18f   : > { %v584_v47 = vadd.f32 %v583_v42, %v582_v39 }
 0x191   : > { %v585_v48 = vrot.slane %v584_v47, 2 }
 0x193   : > { %v586_v49 = vadd.f32 %v585_v48, %v584_v47 }
 0x195   : > { %v587_v50 = vrot.slane %v586_v49, 1 }
 0x197   : > { %v588_v51 = vadd.f32 %v587_v50, %v586_v49 }
 0x199   : > { %739 = vpush %v588_v51 }
 0x1ca   : > { %s740_s9 = spop %739 }
 0x1cb   : > { %s590_s19 = smul.f32 9.191177e-05, %s740_s9 }
 0x1cd   : > { %v591_v52 = vstv %s590_s19 }
 0x1ce   : > { %593 = vst.msk [vmem:[%s305_s3] sm:$0x1] %vm592_vm3, %v591_v52 }
 0x1cf PF: > { %s18_s16 = sadd.s32 1, %s889_s16   ;;  %s1253_s25 = sld [smem:[#allocation18_spill]] }
 0x1d0   : > { %p15_p7 = scmp.ge.s32.totalorder %s18_s16, 8   ;;  %s1254_s18 = sld [smem:[#allocation16_spill]] }
 0x1d1   : > { %s1255_s26 = sld [smem:[#allocation17_spill]]  ;;  %s1256_s9 = smov %s865_s10 }
 0x1d2   : > { %s1257_s10 = smov %s869_s11  ;;  %s1259_s12 = smov %s881_s14 }
 0x1d3   : > { %s1260_s13 = smov %s885_s15  ;;  %17 = sbr.rel (!%p15_p7) target bundleno = 7 (0x7), region = 110 }
 0x1d5   : > { %s1258_s11 = smov %s1253_s25 }
 0x1d6   : > { %s1261_s14 = smov %s1254_s18 }
 0x1d7   : > { %s1262_s15 = smov %s1255_s26 }
 0x1d8   :  { %611 = vsyncpa [#allocation7], 1 }
 0x1d9   :  { %613 = vsyncpa [#allocation7 + $0x1], 1 }
 0x1da   :  { %614 = vsyncpa [#allocation9], 1 }
 0x1db   :  { %616 = vsyncpa [#allocation9 + $0x1], 1 }

</bundles_post_ra>
